<compile_context>
chip_gen: v6e
topology: v6e:2x2x1
jax: 0.10.0
libtpu: 0.0.40
codegen_flags: <defaults>
</compile_context>

<pallas_src>
import functools
import math

import jax
import jax.numpy as jnp
from jax.experimental import pallas as pl
from jax.experimental.pallas import tpu as pltpu


_COMPILER_PARAMS = pltpu.CompilerParams(dimension_semantics=("arbitrary",))


def _full_specs(*shapes):
    """Whole-array BlockSpecs for a grid=(1,) pallas_call."""
    return [pl.BlockSpec(s, (lambda i, r=len(s): (0,) * r)) for s in shapes]


# --------------------------- LayerNorm kernel (embeddings) -------------------

def _layernorm_kernel(x_ref, g_ref, b_ref, o_ref, *, eps):
    x = x_ref[...]
    mean = jnp.mean(x, axis=-1, keepdims=True)
    var = jnp.mean(jnp.square(x - mean), axis=-1, keepdims=True)
    o_ref[...] = (x - mean) * jax.lax.rsqrt(var + eps) * g_ref[...] + b_ref[...]


def pallas_layernorm(x, gamma, beta, eps=1e-12):
    M, H = x.shape
    return pl.pallas_call(
        functools.partial(_layernorm_kernel, eps=eps),
        out_shape=jax.ShapeDtypeStruct((M, H), jnp.float32),
        grid=(1,),
        in_specs=_full_specs((M, H), (1, H), (1, H)),
        out_specs=pl.BlockSpec((M, H), lambda i: (0, 0)),
        compiler_params=_COMPILER_PARAMS,
    )(x, gamma, beta)


# --------------------------- fused encoder layer ------------------------------

def _encoder_layer_kernel(x_ref, wqkv_ref, bqkv_ref, wao_ref, bao_ref,
                          ln1g_ref, ln1b_ref, wfi_ref, bfi_ref,
                          wfo_ref, bfo_ref, ln2g_ref, ln2b_ref, o_ref,
                          *, batch, seq, num_heads, head_dim, eps):
    M, H = x_ref.shape
    x = x_ref[...]                                # (M, H) f32, resident in VMEM
    xb = x.astype(jnp.bfloat16)
    scale = 1.0 / math.sqrt(head_dim)

    # --- multi-head self-attention (head split/merge fully in-VMEM) ---------
    attn_acc = jnp.zeros((M, H), jnp.float32)
    for h in range(num_heads):                    # static unroll (nH small)
        def proj(j):
            w = wqkv_ref[j]                       # (H, Dh) bf16
            b = bqkv_ref[j]                       # (1, Dh) f32
            y = jnp.dot(xb, w, preferred_element_type=jnp.float32) + b
            return y.reshape(batch, seq, head_dim)

        q = proj(0 * num_heads + h)
        k = proj(1 * num_heads + h)
        v = proj(2 * num_heads + h)

        s = jnp.einsum("bqd,bkd->bqk",
                       q.astype(jnp.bfloat16), k.astype(jnp.bfloat16),
                       preferred_element_type=jnp.float32) * scale
        # TODO(synk): no attention (padding) mask -- matches the spec, which calls
        #             self.bert(input_ids=input_ids) with no attention_mask.
        m = jnp.max(s, axis=-1, keepdims=True)
        e = jnp.exp(s - m)
        p = e * pl.reciprocal(jnp.sum(e, axis=-1, keepdims=True), approx=True)
        ctx = jnp.einsum("bqk,bkd->bqd",
                         p.astype(jnp.bfloat16), v.astype(jnp.bfloat16),
                         preferred_element_type=jnp.float32)
        ctx = ctx.reshape(M, head_dim)
        # merge-heads + output projection: sum_h ctx_h @ W_attn_out[h]
        attn_acc = attn_acc + jnp.dot(ctx.astype(jnp.bfloat16), wao_ref[h],
                                      preferred_element_type=jnp.float32)
    attn_out = attn_acc + bao_ref[...]

    # --- residual + LayerNorm1 (f32) -----------------------------------------
    h1 = attn_out + x
    mean1 = jnp.mean(h1, axis=-1, keepdims=True)
    var1 = jnp.mean(jnp.square(h1 - mean1), axis=-1, keepdims=True)
    x1 = (h1 - mean1) * jax.lax.rsqrt(var1 + eps) * ln1g_ref[...] + ln1b_ref[...]

    # --- FFN (bf16 matmuls, f32 GELU) ----------------------------------------
    inter = jnp.dot(x1.astype(jnp.bfloat16), wfi_ref[...],
                    preferred_element_type=jnp.float32) + bfi_ref[...]
    # TODO(synk): tanh-approx GELU; HuggingFace BERT default is exact erf GELU.
    inter = 0.5 * inter * (1.0 + jnp.tanh(
        0.7978845608028654 * (inter + 0.044715 * inter * inter * inter)))
    ffn = jnp.dot(inter.astype(jnp.bfloat16), wfo_ref[...],
                  preferred_element_type=jnp.float32) + bfo_ref[...]

    # --- residual + LayerNorm2 (f32) -----------------------------------------
    h2 = ffn + x1
    mean2 = jnp.mean(h2, axis=-1, keepdims=True)
    var2 = jnp.mean(jnp.square(h2 - mean2), axis=-1, keepdims=True)
    o_ref[...] = (h2 - mean2) * jax.lax.rsqrt(var2 + eps) * ln2g_ref[...] + ln2b_ref[...]


def pallas_encoder_layer(x, layer, cfg, B, S):
    M, H = x.shape
    nH = cfg["heads"]
    Dh = H // nH
    I = cfg["intermediate"]
    kernel = functools.partial(_encoder_layer_kernel,
                               batch=B, seq=S, num_heads=nH, head_dim=Dh, eps=1e-12)
    shapes = [
        (M, H),                        # x
        (3 * nH, H, Dh),               # packed QKV weights
        (3 * nH, 1, Dh),               # packed QKV biases
        (nH, Dh, H),                   # attn output proj weight (per-head slabs)
        (1, H),                        # attn output proj bias
        (1, H), (1, H),                # LN1 gamma / beta
        (H, I), (1, I),                # FFN in
        (I, H), (1, H),                # FFN out
        (1, H), (1, H),                # LN2 gamma / beta
    ]
    return pl.pallas_call(
        kernel,
        out_shape=jax.ShapeDtypeStruct((M, H), jnp.float32),
        grid=(1,),
        in_specs=_full_specs(*shapes),
        out_specs=pl.BlockSpec((M, H), lambda i: (0, 0)),
        compiler_params=_COMPILER_PARAMS,
    )(x, layer["wqkv"], layer["bqkv"], layer["w_attn_out"], layer["b_attn_out"],
      layer["ln1_g"], layer["ln1_b"], layer["w_ffn_in"], layer["b_ffn_in"],
      layer["w_ffn_out"], layer["b_ffn_out"], layer["ln2_g"], layer["ln2_b"])


# --------------------------- fused pooler + 4 heads ---------------------------

def _pooler_heads_kernel(cls_ref, wp_ref, bp_ref, wh_ref, bh_ref, o_ref):
    pooled = jnp.tanh(
        jnp.dot(cls_ref[...].astype(jnp.bfloat16), wp_ref[...],
                preferred_element_type=jnp.float32) + bp_ref[...])
    o_ref[...] = jnp.dot(pooled.astype(jnp.bfloat16), wh_ref[...],
                         preferred_element_type=jnp.float32) + bh_ref[...]


def pallas_pooler_heads(cls, w_pool, b_pool, w_heads, b_heads):
    B, H = cls.shape
    Np = w_heads.shape[1]
    return pl.pallas_call(
        _pooler_heads_kernel,
        out_shape=jax.ShapeDtypeStruct((B, Np), jnp.float32),
        grid=(1,),
        in_specs=_full_specs((B, H), (H, H), (1, H), (H, Np), (1, Np)),
        out_specs=pl.BlockSpec((B, Np), lambda i: (0, 0)),
        compiler_params=_COMPILER_PARAMS,
    )(cls, w_pool, b_pool, w_heads, b_heads)


# --------------------------- parameter init ----------------------------------

def _dense_w(key, fan_in, fan_out):
    return jax.random.normal(key, (fan_in, fan_out), jnp.float32) * 0.02


def init_params(key, cfg):
    H, I, nH = cfg["hidden"], cfg["intermediate"], cfg["heads"]
    Dh = H // nH
    keys = iter(jax.random.split(key, 64))
    params = {
        "word_emb": jax.random.normal(next(keys), (cfg["vocab"], H), jnp.float32) * 0.02,
        "pos_emb": jax.random.normal(next(keys), (cfg["max_pos"], H), jnp.float32) * 0.02,
        "type_emb": jax.random.normal(next(keys), (2, H), jnp.float32) * 0.02,
        "emb_ln_g": jnp.ones((1, H), jnp.float32),
        "emb_ln_b": jnp.zeros((1, H), jnp.float32),
        "layers": [],
    }
    for _ in range(cfg["layers"]):
        wq = _dense_w(next(keys), H, H)
        wk = _dense_w(next(keys), H, H)
        wv = _dense_w(next(keys), H, H)
        # Pack per (projection, head) slabs: index j = proj*nH + head -> (H, Dh).
        wqkv = jnp.stack(
            [w.reshape(H, nH, Dh)[:, h, :] for w in (wq, wk, wv) for h in range(nH)],
            axis=0).astype(jnp.bfloat16)
        w_ao = _dense_w(next(keys), H, H)
        params["layers"].append({
            "wqkv": wqkv,                                       # (3*nH, H, Dh) bf16
            "bqkv": jnp.zeros((3 * nH, 1, Dh), jnp.float32),
            "w_attn_out": w_ao.reshape(nH, Dh, H).astype(jnp.bfloat16),
            "b_attn_out": jnp.zeros((1, H), jnp.float32),
            "ln1_g": jnp.ones((1, H), jnp.float32),
            "ln1_b": jnp.zeros((1, H), jnp.float32),
            "w_ffn_in": _dense_w(next(keys), H, I).astype(jnp.bfloat16),
            "b_ffn_in": jnp.zeros((1, I), jnp.float32),
            "w_ffn_out": _dense_w(next(keys), I, H).astype(jnp.bfloat16),
            "b_ffn_out": jnp.zeros((1, H), jnp.float32),
            "ln2_g": jnp.ones((1, H), jnp.float32),
            "ln2_b": jnp.zeros((1, H), jnp.float32),
        })
    # Pooler.
    params["w_pool"] = _dense_w(next(keys), H, H).astype(jnp.bfloat16)
    params["b_pool"] = jnp.zeros((1, H), jnp.float32)
    # Four classification heads concatenated along N, zero-padded to 128 lanes.
    head_dims = [cfg["num_cause_subjects"], cfg["num_cause_states"],
                 cfg["num_effect_subjects"], cfg["num_effect_states"]]
    n_total = sum(head_dims)
    n_pad = max(128, ((n_total + 127) // 128) * 128)
    w_heads = jnp.concatenate([_dense_w(next(keys), H, n) for n in head_dims], axis=1)
    params["w_heads"] = jnp.pad(w_heads, ((0, 0), (0, n_pad - n_total))).astype(jnp.bfloat16)
    params["b_heads"] = jnp.zeros((1, n_pad), jnp.float32)
    params["head_dims"] = head_dims
    return params


# --------------------------- forward pass -------------------------------------

def bert_multi_output_forward(params, input_ids, cfg):
    B, S = input_ids.shape
    H = cfg["hidden"]

    # Embedding gather (word + position + token-type=0) in plain JAX, then LN.
    emb = (params["word_emb"][input_ids]
           + params["pos_emb"][:S][None, :, :]
           + params["type_emb"][0][None, None, :])
    x = pallas_layernorm(emb.reshape(B * S, H), params["emb_ln_g"], params["emb_ln_b"])

    # One fused pallas_call per encoder layer.
    for layer in params["layers"]:
        x = pallas_encoder_layer(x, layer, cfg, B, S)

    hidden = x.reshape(B, S, H)
    cls = hidden[:, 0, :]
    # BERT pooler (tanh(Linear(CLS))) + all 4 heads fused in one call.
    logits = pallas_pooler_heads(cls, params["w_pool"], params["b_pool"],
                                 params["w_heads"], params["b_heads"])
    d0, d1, d2, d3 = params["head_dims"]
    cause_subject = logits[:, :d0]
    cause_state = logits[:, d0:d0 + d1]
    effect_subject = logits[:, d0 + d1:d0 + d1 + d2]
    effect_state = logits[:, d0 + d1 + d2:d0 + d1 + d2 + d3]
    return cause_subject, cause_state, effect_subject, effect_state


# --------------------------- main ----------------------------------------------

if __name__ == "__main__":
    cfg = dict(
        vocab=50, hidden=32, heads=2, layers=2, intermediate=64, max_pos=16,
        num_cause_subjects=5, num_cause_states=4,
        num_effect_subjects=6, num_effect_states=3,
    )
    key = jax.random.PRNGKey(0)
    k_params, k_ids = jax.random.split(key)
    params = init_params(k_params, cfg)

    B, S = 2, 8
    input_ids = jax.random.randint(k_ids, (B, S), 0, cfg["vocab"], dtype=jnp.int32)

    outs = bert_multi_output_forward(params, input_ids, cfg)
    outs = jax.block_until_ready(outs)

    assert outs[0].shape == (B, cfg["num_cause_subjects"])
    assert outs[1].shape == (B, cfg["num_cause_states"])
    assert outs[2].shape == (B, cfg["num_effect_subjects"])
    assert outs[3].shape == (B, cfg["num_effect_states"])
    assert all(bool(jnp.all(jnp.isfinite(o))) for o in outs)
    print("KERNEL_OK")
</pallas_src>

<mosaic_0001>
module attributes {stable_mosaic.version = 11 : i64} {
  func.func @_layernorm_kernel(%arg0: i32, %arg1: memref<16x32xf32, #tpu.memory_space<vmem>>, %arg2: memref<1x32xf32, #tpu.memory_space<vmem>>, %arg3: memref<1x32xf32, #tpu.memory_space<vmem>>, %arg4: memref<16x32xf32, #tpu.memory_space<vmem>>) attributes {dimension_semantics = [#tpu.dimension_semantics<arbitrary>], iteration_bounds = array<i64: 1>, scalar_prefetch = 0 : i64, scratch_operands = 0 : i64, tpu.core_type = #tpu.core_type<tc>, window_params = [{pipeline_mode = #tpu.pipeline_mode<synchronous>, transform_indices = @transform_0, window_bounds = array<i64: 16, 32>}, {pipeline_mode = #tpu.pipeline_mode<synchronous>, transform_indices = @transform_1, window_bounds = array<i64: 1, 32>}, {pipeline_mode = #tpu.pipeline_mode<synchronous>, transform_indices = @transform_2, window_bounds = array<i64: 1, 32>}, {pipeline_mode = #tpu.pipeline_mode<synchronous>, transform_indices = @transform_3, window_bounds = array<i64: 16, 32>}]} {
    %c0 = arith.constant 0 : index
    %c0_0 = arith.constant 0 : index
    %0 = vector.load %arg1[%c0, %c0_0] : memref<16x32xf32, #tpu.memory_space<vmem>>, vector<16x32xf32>
    %cst = arith.constant dense<0.000000e+00> : vector<16xf32>
    %1 = vector.multi_reduction <add>, %0, %cst [1] : vector<16x32xf32> to vector<16xf32>
    %2 = vector.shape_cast %1 : vector<16xf32> to vector<16x1xf32>
    %cst_1 = arith.constant 3.200000e+01 : f32
    %3 = vector.broadcast %cst_1 : f32 to vector<16x1xf32>
    %4 = arith.divf %2, %3 : vector<16x1xf32>
    %5 = vector.broadcast %4 : vector<16x1xf32> to vector<16x32xf32>
    %6 = arith.subf %0, %5 : vector<16x32xf32>
    %7 = arith.mulf %6, %6 : vector<16x32xf32>
    %cst_2 = arith.constant dense<0.000000e+00> : vector<16xf32>
    %8 = vector.multi_reduction <add>, %7, %cst_2 [1] : vector<16x32xf32> to vector<16xf32>
    %9 = vector.shape_cast %8 : vector<16xf32> to vector<16x1xf32>
    %cst_3 = arith.constant 3.200000e+01 : f32
    %10 = vector.broadcast %cst_3 : f32 to vector<16x1xf32>
    %11 = arith.divf %9, %10 : vector<16x1xf32>
    %12 = vector.broadcast %4 : vector<16x1xf32> to vector<16x32xf32>
    %13 = arith.subf %0, %12 : vector<16x32xf32>
    %cst_4 = arith.constant 9.99999996E-13 : f32
    %14 = vector.broadcast %cst_4 : f32 to vector<16x1xf32>
    %15 = arith.addf %11, %14 : vector<16x1xf32>
    %16 = math.rsqrt %15 : vector<16x1xf32>
    %17 = vector.broadcast %16 : vector<16x1xf32> to vector<16x32xf32>
    %18 = arith.mulf %13, %17 : vector<16x32xf32>
    %c0_5 = arith.constant 0 : index
    %c0_6 = arith.constant 0 : index
    %19 = vector.load %arg2[%c0_5, %c0_6] : memref<1x32xf32, #tpu.memory_space<vmem>>, vector<1x32xf32>
    %20 = vector.broadcast %19 : vector<1x32xf32> to vector<16x32xf32>
    %21 = arith.mulf %18, %20 : vector<16x32xf32>
    %c0_7 = arith.constant 0 : index
    %c0_8 = arith.constant 0 : index
    %22 = vector.load %arg3[%c0_7, %c0_8] : memref<1x32xf32, #tpu.memory_space<vmem>>, vector<1x32xf32>
    %23 = vector.broadcast %22 : vector<1x32xf32> to vector<16x32xf32>
    %24 = arith.addf %21, %23 : vector<16x32xf32>
    %c0_9 = arith.constant 0 : index
    %c0_10 = arith.constant 0 : index
    %25 = vector.load %arg4[%c0_9, %c0_10] : memref<16x32xf32, #tpu.memory_space<vmem>>, vector<16x32xf32>
    tpu.vector_store %arg4[%c0_9, %c0_10], %24 {strides = array<i32>} : memref<16x32xf32, #tpu.memory_space<vmem>>, vector<16x32xf32>,
    return
  }
  func.func @transform_0(%arg0: i32) -> (i32, i32) {
    %c0_i32 = arith.constant 0 : i32
    %c0_i32_0 = arith.constant 0 : i32
    %c0_i32_1 = arith.constant 0 : i32
    return %c0_i32, %c0_i32_0 : i32, i32
  }
  func.func @transform_1(%arg0: i32) -> (i32, i32) {
    %c0_i32 = arith.constant 0 : i32
    %c0_i32_0 = arith.constant 0 : i32
    %c0_i32_1 = arith.constant 0 : i32
    return %c0_i32, %c0_i32_0 : i32, i32
  }
  func.func @transform_2(%arg0: i32) -> (i32, i32) {
    %c0_i32 = arith.constant 0 : i32
    %c0_i32_0 = arith.constant 0 : i32
    %c0_i32_1 = arith.constant 0 : i32
    return %c0_i32, %c0_i32_0 : i32, i32
  }
  func.func @transform_3(%arg0: i32) -> (i32, i32) {
    %c0_i32 = arith.constant 0 : i32
    %c0_i32_0 = arith.constant 0 : i32
    %c0_i32_1 = arith.constant 0 : i32
    return %c0_i32, %c0_i32_0 : i32, i32
  }
}

</mosaic_0001>

<bundles_post_ra>
// kernel: tpu_custom_call.1
= control target key start
LH: loop header
LB: loop body
LE: loop exit
PB: predicated region body
PF: predicated region fallthrough
CT: control target
= control target key end

     0   :  { %8 = vsyncpa [#allocation3], 0  ;;  %s198_s0 = inlined_call_operand.hbm [shape: f32[16,32], index: 0, kind: input, shape index: {}]   ;;  %s199_s1 = inlined_call_operand.vmem [shape: f32[1,32], index: 1, kind: input, shape index: {}]   ;;  %s200_s2 = inlined_call_operand.vmem [shape: f32[1,32], index: 2, kind: input, shape index: {}]   ;;  %s201_s3 = inlined_call_operand.hbm [shape: f32[16,32], index: 3, kind: output, shape index: {}]  }
   0x1   :  { %9 = vsyncpa [#allocation4], 0  ;;  %s150_s12 = smov [#allocation2]  }
   0x2   :  { %s15_s13 = sshll.u32 %s150_s12, 4  ;;  %s16_s13 = int_to_ptr.vmem [resolvable:$true] %s15_s13 }
   0x3   :  { %s114_s14 = scalar_lea.vmem %s16_s13, 256  ;;  %p119_p1 = scmp.lt.s32.totalorder %s16_s13, %s16_s13 }
   0x4   :  { %p115_p0 = scmp.ne.s32.totalorder %s16_s13, %s114_s14  ;;  %p120_p2 = scmp.lt.s32.totalorder %s114_s14, %s114_s14 }
   0x6   :  { %p121_p3 = por %p120_p2, %p119_p1 }
   0x8   :  { %p122_p4 = pnand %p121_p3, %p115_p0 }
   0xa   :  { %125 = shalt.err (!%p122_p4)
}
   0xb   :  { %s151_s15 = smov 128   ;;  %s152_s16 = smov 8  }
   0xc   :  { %21 = dma.hbm_to_vmem [thread:$0]  %s198_s0, 256, %s16_s13, [#allocation3], %s151_s15, %s151_s15, %s152_s16  }
   0xd   :  { %146 = dma.done.wait [#allocation3], 256  }
   0xe   :  { %147 = vsyncadd [#allocation3], 4294967040  ;;  %vm31_vm0 = vcmask 261120   ;;  %v29_v0 = vld [vmem:[#allocation2] sm:$0xff]  ;;  %v30_v1 = vld [vmem:[#allocation2 + $0x8] sm:$0xff]  ;;  %s153_s22 = smov [#allocation5]  }
   0xf   :  { %v32_v2 = vsel %vm31_vm0, %v29_v0, 0.0  ;;  %v35_v3 = vsel %vm31_vm0, %v30_v1, 0.0  ;;  %v96_v21 = vld [vmem:[%s199_s1] ss:$0 sm:$0xff]  ;;  %s84_s23 = sshll.u32 %s153_s22, 4  ;;  %s85_s23 = int_to_ptr.vmem [resolvable:$true] %s84_s23 }
  0x10   :  { %33 = vadd.xlane.f32.xlu0 %v32_v2  ;;  %v97_v23 = vld [vmem:[%s200_s2] ss:$0 sm:$0xff]  ;;  %s126_s24 = scalar_lea.vmem %s85_s23, 256  ;;  %p131_p6 = scmp.lt.s32.totalorder %s85_s23, %s85_s23 }
  0x11   :  { %p127_p5 = scmp.ne.s32.totalorder %s85_s23, %s126_s24  ;;  %p132_p7 = scmp.lt.s32.totalorder %s126_s24, %s126_s24 }
  0x13   :  { %p133_p8 = por %p132_p7, %p131_p6 }
  0x14   :  { %36 = vadd.xlane.f32.xlu0 %v35_v3 }
  0x15   :  { %p134_p9 = pnand %p133_p8, %p127_p5 }
  0x99   :  { %v34_v4 = vpop.xlane.xlu0 %33 }
  0x9a   :  { %v39_v5 = vmul.f32 0.03125, %v34_v4 }
  0x9c   :  { %v41_v6 = vsub.f32 %v29_v0, %v39_v5 }
  0x9d   :  { %v37_v7 = vpop.xlane.xlu0 %36 }
  0x9e   :  { %v40_v8 = vmul.f32 0.03125, %v37_v7  ;;  %v43_v9 = vmul.f32 %v41_v6, %v41_v6 }
  0xa0   :  { %v42_v10 = vsub.f32 %v30_v1, %v40_v8  ;;  %v45_v11 = vsel %vm31_vm0, %v43_v9, 0.0 }
  0xa1   :  { %46 = vadd.xlane.f32.xlu1 %v45_v11 }
  0xa2   :  { %v44_v12 = vmul.f32 %v42_v10, %v42_v10 }
  0xa4   :  { %v48_v13 = vsel %vm31_vm0, %v44_v12, 0.0 }
  0xa5   :  { %49 = vadd.xlane.f32.xlu1 %v48_v13 }
 0x12a   :  { %v47_v14 = vpop.xlane.xlu1 %46 }
 0x12b   :  { %v51_v15 = vmul.f32 0.03125, %v47_v14 }
 0x12d   :  { %v53_v16 = vadd.f32 1e-12, %v51_v15 }
 0x12e   :  { %v50_v17 = vpop.xlane.xlu1 %49 }
 0x12f   :  { %102 = vrsqrt.f32 %v53_v16  ;;  %v52_v18 = vmul.f32 0.03125, %v50_v17 }
 0x131   :  { %v54_v19 = vadd.f32 1e-12, %v52_v18 }
 0x133   :  { %104 = vrsqrt.f32 %v54_v19 }
 0x13c   :  { %v103_v20 = vpop.eup %102 }
 0x13d   :  { %v57_v22 = vmul.f32 %v103_v20, %v41_v6 }
 0x13f   :  { %v66_v24 = vmul.f32 %v96_v21, %v57_v22 }
 0x140   :  { %v105_v25 = vpop.eup %104 }
 0x141   :  { %v58_v26 = vmul.f32 %v105_v25, %v42_v10  ;;  %v75_v27 = vadd.f32 %v97_v23, %v66_v24 }
 0x143   :  { %v67_v28 = vmul.f32 %v96_v21, %v58_v26  ;;  %77 = vst.msk [vmem:[#allocation5] sm:$0xff] %vm31_vm0, %v75_v27 }
 0x145   :  { %v76_v29 = vadd.f32 %v97_v23, %v67_v28 }
 0x147   :  { %78 = vst.msk [vmem:[#allocation5 + $0x8] sm:$0xff] %vm31_vm0, %v76_v29 }
 0x148   :  { %137 = shalt.err (!%p134_p9)
}
 0x149   :  { %90 = dma.vmem_to_hbm [thread:$0]  %s85_s23, 256, %s201_s3, [#allocation4], %s151_s15, %s151_s15, %s152_s16  }
 0x14a   :  { %148 = dma.done.wait [#allocation4], 256  }
 0x14b   :  { %149 = vsyncadd [#allocation4], 4294967040 }
 0x14c   :  { %94 = vsyncpa [#allocation3], 1 }
 0x14d   :  { %95 = vsyncpa [#allocation4], 1 }

</bundles_post_ra>
